<compile_context>
chip_gen: v7x
topology: tpu7x:2x2x1
jax: 0.10.0
libtpu: 0.0.40
codegen_flags: <defaults>
</compile_context>

<pallas_src>
import functools

import jax
import jax.numpy as jnp
from jax.experimental import pallas as pl
from jax.experimental.pallas import tpu as pltpu


# ----------------------------------------------------------------------------
# Pallas kernel: one tile of tokens through the projection Linear
# ----------------------------------------------------------------------------
def _patchup_proj_kernel(x_ref, w_ref, b_ref, o_ref):
    """o = x @ w + b for one [tm, C_in] tile of tokens.

    x_ref : [tm, C_in]
    w_ref : [C_in, 4*out]   (pre-transposed Linear weight)
    b_ref : [1, 4*out]
    o_ref : [tm, 4*out]
    """
    x = x_ref[...]
    y = jnp.dot(x, w_ref[...], preferred_element_type=jnp.float32) + b_ref[...]
    o_ref[...] = y.astype(o_ref.dtype)


# ----------------------------------------------------------------------------
# Wrapper: tiled pallas_call over the flattened token dimension
# ----------------------------------------------------------------------------
def _patchup_proj(xf, w_t, bias_row, *, max_tm=512):
    """xf: [T, C_in] tokens, w_t: [C_in, 4*out], bias_row: [1, 4*out] -> [T, 4*out]."""
    t, cin = xf.shape
    cout4 = w_t.shape[1]

    # Tile over tokens: large tile for pipelining, multiple of 8 (sublane),
    # never "the whole activation in one block".
    tm = min(max_tm, t)
    tm = -(-tm // 8) * 8                      # round up to a multiple of 8
    t_pad = pl.cdiv(t, tm) * tm
    if t_pad != t:
        xf = jnp.pad(xf, ((0, t_pad - t), (0, 0)))

    grid = (t_pad // tm,)

    cost = pl.CostEstimate(
        flops=2 * t_pad * cin * cout4,
        transcendentals=0,
        bytes_accessed=4 * (t_pad * cin + cin * cout4 + cout4 + t_pad * cout4),
    )

    out = pl.pallas_call(
        _patchup_proj_kernel,
        out_shape=jax.ShapeDtypeStruct((t_pad, cout4), xf.dtype),
        grid=grid,
        in_specs=[
            pl.BlockSpec((tm, cin), lambda i: (i, 0)),
            pl.BlockSpec((cin, cout4), lambda i: (0, 0)),
            pl.BlockSpec((1, cout4), lambda i: (0, 0)),
        ],
        out_specs=pl.BlockSpec((tm, cout4), lambda i: (i, 0)),
        compiler_params=pltpu.CompilerParams(
            dimension_semantics=("parallel",),
        ),
        cost_estimate=cost,
    )(xf, w_t, bias_row)

    if t_pad != t:
        out = out[:t]
    return out


# ----------------------------------------------------------------------------
# Full PatchUp forward (Linear in Pallas, pixel-shuffle as JAX layout glue)
# ----------------------------------------------------------------------------
def patch_up_forward(x, weight, bias, *, out_channels, max_tm=512):
    """x: [B, H, W, C_in] NHWC.  weight: [4*out, C_in] (PyTorch Linear layout).
    Returns [B, 2H, 2W, out_channels] NHWC."""
    b, h, w, cin = x.shape
    cout4 = 4 * out_channels
    assert weight.shape == (cout4, cin)

    xf = x.reshape(b * h * w, cin)
    y = _patchup_proj(xf, weight.T, bias.reshape(1, cout4), max_tm=max_tm)

    # pixel_shuffle(r=2) in NHWC: out[b, 2h+i, 2w+j, c] = y[b, h, w, c*4 + 2i + j]
    y = y.reshape(b, h, w, out_channels, 2, 2)       # [..., c, i, j]
    y = y.transpose(0, 1, 4, 2, 5, 3)                # [b, h, i, w, j, c]
    return y.reshape(b, 2 * h, 2 * w, out_channels)


# ----------------------------------------------------------------------------
# Deterministic parameter init matching reset_parameters()
#   xavier_uniform_ on weight, zeros on bias
# ----------------------------------------------------------------------------
def init_params(key, in_channels, out_channels):
    cout4 = 4 * out_channels
    limit = (6.0 / (in_channels + cout4)) ** 0.5
    weight = jax.random.uniform(key, (cout4, in_channels), jnp.float32,
                                minval=-limit, maxval=limit)
    bias = jnp.zeros((cout4,), jnp.float32)
    return weight, bias


# ----------------------------------------------------------------------------
# Pure-JAX reference (mirrors the PyTorch module exactly) for verification
# ----------------------------------------------------------------------------
def patch_up_reference(x, weight, bias, out_channels):
    b, h, w, cin = x.shape
    y = jnp.einsum("bhwc,oc->bhwo", x, weight) + bias      # Linear
    y = y.transpose(0, 3, 1, 2)                            # NCHW, C = 4*out
    # pixel_shuffle r=2
    y = y.reshape(b, out_channels, 2, 2, h, w)
    y = y.transpose(0, 1, 4, 2, 5, 3)                      # [b, c, h, 2, w, 2]
    y = y.reshape(b, out_channels, 2 * h, 2 * w)
    return y.transpose(0, 2, 3, 1)                         # back to NHWC


if __name__ == "__main__":
    key = jax.random.PRNGKey(0)
    kx, kp = jax.random.split(key)

    B, H, W = 2, 16, 16
    IN_CHANNELS, OUT_CHANNELS = 32, 8

    x = jax.random.normal(kx, (B, H, W, IN_CHANNELS), jnp.float32)   # NHWC
    weight, bias = init_params(kp, IN_CHANNELS, OUT_CHANNELS)

    fwd = jax.jit(functools.partial(patch_up_forward,
                                    out_channels=OUT_CHANNELS,
                                    max_tm=256))   # T = 512 -> 2 grid steps (megacore-friendly)
    out = fwd(x, weight, bias)
    jax.block_until_ready(out)

    assert out.shape == (B, 2 * H, 2 * W, OUT_CHANNELS), out.shape
    assert out.dtype == x.dtype
    assert bool(jnp.all(jnp.isfinite(out)))

    ref = patch_up_reference(x, weight, bias, OUT_CHANNELS)
    assert bool(jnp.allclose(out, ref, rtol=1e-5, atol=1e-4)), "mismatch vs reference"

    print("KERNEL_OK")
</pallas_src>

<mosaic_0001>
module attributes {stable_mosaic.version = 11 : i64} {
  func.func @_patchup_proj_kernel(%arg0: i32, %arg1: memref<256x32xf32, #tpu.memory_space<vmem>>, %arg2: memref<32x32xf32, #tpu.memory_space<vmem>>, %arg3: memref<1x32xf32, #tpu.memory_space<vmem>>, %arg4: memref<256x32xf32, #tpu.memory_space<vmem>>) attributes {dimension_semantics = [#tpu.dimension_semantics<parallel>], iteration_bounds = array<i64: 2>, scalar_prefetch = 0 : i64, scratch_operands = 0 : i64, tpu.core_type = #tpu.core_type<tc>, window_params = [{transform_indices = @transform_0, window_bounds = array<i64: 256, 32>}, {pipeline_mode = #tpu.pipeline_mode<synchronous>, transform_indices = @transform_1, window_bounds = array<i64: 32, 32>}, {pipeline_mode = #tpu.pipeline_mode<synchronous>, transform_indices = @transform_2, window_bounds = array<i64: 1, 32>}, {transform_indices = @transform_3, window_bounds = array<i64: 256, 32>}]} {
    %c0 = arith.constant 0 : index
    %c0_0 = arith.constant 0 : index
    %0 = vector.load %arg1[%c0, %c0_0] : memref<256x32xf32, #tpu.memory_space<vmem>>, vector<256x32xf32>
    %c0_1 = arith.constant 0 : index
    %c0_2 = arith.constant 0 : index
    %1 = vector.load %arg2[%c0_1, %c0_2] : memref<32x32xf32, #tpu.memory_space<vmem>>, vector<32x32xf32>
    %cst = arith.constant dense<0.000000e+00> : vector<256x32xf32>
    %2 = tpu.matmul %0, %1, %cst {dimension_numbers = #tpu.dot_dimension_numbers<[1], [0], [0], [1], [0, 0, 1, 1], [], []>} : vector<256x32xf32>, vector<32x32xf32>, vector<256x32xf32> -> vector<256x32xf32>
    %c0_3 = arith.constant 0 : index
    %c0_4 = arith.constant 0 : index
    %3 = vector.load %arg3[%c0_3, %c0_4] : memref<1x32xf32, #tpu.memory_space<vmem>>, vector<1x32xf32>
    %4 = vector.broadcast %3 : vector<1x32xf32> to vector<256x32xf32>
    %5 = arith.addf %2, %4 : vector<256x32xf32>
    %c0_5 = arith.constant 0 : index
    %c0_6 = arith.constant 0 : index
    %6 = vector.load %arg4[%c0_5, %c0_6] : memref<256x32xf32, #tpu.memory_space<vmem>>, vector<256x32xf32>
    tpu.vector_store %arg4[%c0_5, %c0_6], %5 {strides = array<i32>} : memref<256x32xf32, #tpu.memory_space<vmem>>, vector<256x32xf32>,
    return
  }
  func.func @transform_0(%arg0: i32) -> (i32, i32) {
    %c0_i32 = arith.constant 0 : i32
    %c0_i32_0 = arith.constant 0 : i32
    return %arg0, %c0_i32 : i32, i32
  }
  func.func @transform_1(%arg0: i32) -> (i32, i32) {
    %c0_i32 = arith.constant 0 : i32
    %c0_i32_0 = arith.constant 0 : i32
    %c0_i32_1 = arith.constant 0 : i32
    return %c0_i32, %c0_i32_0 : i32, i32
  }
  func.func @transform_2(%arg0: i32) -> (i32, i32) {
    %c0_i32 = arith.constant 0 : i32
    %c0_i32_0 = arith.constant 0 : i32
    %c0_i32_1 = arith.constant 0 : i32
    return %c0_i32, %c0_i32_0 : i32, i32
  }
  func.func @transform_3(%arg0: i32) -> (i32, i32) {
    %c0_i32 = arith.constant 0 : i32
    %c0_i32_0 = arith.constant 0 : i32
    return %arg0, %c0_i32 : i32, i32
  }
}

</mosaic_0001>

<bundles_post_ra>
// kernel: patch_up_forward.1
= control target key start
LH: loop header
LB: loop body
LE: loop exit
PB: predicated region body
PF: predicated region fallthrough
CT: control target
= control target key end

     0   :  { %8 = vsyncpa [#allocation3], 0  ;;  %s1226_s0 = inlined_call_operand.hbm [shape: f32[512,32], index: 0, kind: input, shape index: {}]   ;;  %s1227_s1 = inlined_call_operand.vmem [shape: f32[32,32], index: 1, kind: input, shape index: {}]   ;;  %s1228_s2 = inlined_call_operand.vmem [shape: f32[1,32], index: 2, kind: input, shape index: {}]   ;;  %s1229_s3 = inlined_call_operand.vmem [shape: f32[512,32], index: 3, kind: output, shape index: {}]  }
   0x1   :  { %10 = vsyncpa [#allocation3 + $0x1], 0  ;;  %s938_s12 = smov 0   ;;  %s940_s13 = smov 0  }
   0x2   :  { %s942_s14 = smov 0   ;;  %s944_s15 = smov 0  }
   0x3 LB: > { %s657_s16 = sadd.s32 4294967295, %s913_s15   ;;  %s958_s17 = sadd.s32 1, %s913_s15   ;;  %s913_s15 = sphi %s944_s15, %s1236_s15   ;;  %s909_s14 = sphi %s942_s14, %s1235_s14   ;;  %s905_s13 = sphi %s940_s13, %s1234_s13   ;;  %s901_s12 = sphi %s938_s12, %s1233_s12  }
   0x4   : > { %s20_s18 = ssub.s32 %s913_s15, %s958_s17  ;;  %s23_s19 = sadd.s32 1, %s909_s14 }
   0x5   : > { %p21_p0 = scmp.eq.s32.totalorder %s20_s18, 0  ;;  %p30_p1 = scmp.ne.s32.totalorder %s909_s14, %s905_s13 }
   0x6   : > { %p31_p2 = scmp.eq.s32.totalorder %s913_s15, 0  ;;  %p36_p3 = scmp.ne.s32.totalorder %s905_s13, %s901_s12 }
   0x7   : > { %s968_s20 = scalar_select %p21_p0, %s909_s14, %s23_s19  }
   0x8   : > { %p32_p4 = por %p31_p2, %p30_p1  ;;  %p37_p5 = scmp.eq.s32.totalorder %s657_s16, 0 }
   0x9   : > { %p814_p6 = scmp.lt.s32.totalorder %s913_s15, 2  ;;  %s134_s22 = sand.u32 1, %s909_s14  }
   0xa   : > { %p973_p7 = por %p37_p5, %p36_p3  ;;  %s661_s23 = sshll.u32 %s134_s22, 8 }
   0xb   : > { %s703_s24 = sshll.u32 %s913_s15, 12  ;;  %s138_s28 = scalar_lea.vmem [#allocation2], %s661_s23 }
   0xc   : > { %s982_s27 = scalar_lea.hbm %s1226_s0, %s703_s24  ;;  %s145_s29 = sshll.u32 %s138_s28, 4  ;;  %s984_s29 = int_to_ptr.vmem [resolvable:$true] %s145_s29 }
   0xd   : > { %p986_p8 = pnand %p814_p6, %p32_p4  ;;  %s991_s4 = scalar_lea.sflag [#allocation3], %s134_s22 }
   0xe   : > { %s849_s5 = scalar_lea.hbm %s982_s27, 4096  ;;  %s854_s8 = scalar_lea.hbm %s1226_s0, 8192 }
   0xf   : > { %p850_p10 = scmp.ne.s32.totalorder %s982_s27, %s849_s5  ;;  %p851_p11 = pneg %p986_p8 }
  0x10   : > { %p855_p0 = scmp.lt.u32.totalorder %s982_s27, %s1226_s0  ;;  %p856_p1 = scmp.lt.u32.totalorder %s854_s8, %s849_s5 }
  0x11   : > { %p852_p12 = pnand %p851_p11, %p850_p10  ;;  %p858_p3 = scmp.lt.u32.totalorder %s849_s5, %s982_s27 }
  0x12   : > { %p857_p2 = por %p856_p1, %p855_p0 }
  0x13   : > { %p853_p13 = pneg %p852_p12 }
  0x14   : > { %p859_p4 = por %p858_p3, %p857_p2 }
  0x16   : > { %p860_p5 = pnand %p859_p4, %p853_p13 }
  0x18   : > { %863 = shalt.err (!%p860_p5)
}
  0x19   : > { %s864_s11 = scalar_lea.vmem %s984_s29, 4096  ;;  %s915_s12 = smov [#allocation2]  }
  0x1a   : > { %p865_p6 = scmp.ne.s32.totalorder %s984_s29, %s864_s11  ;;  %s869_s18 = sshll.u32 %s915_s12, 4  ;;  %s870_s18 = int_to_ptr.vmem [resolvable:$false] %s869_s18 }
  0x1b   : > { %s871_s19 = scalar_lea.vmem %s870_s18, 8192  ;;  %p872_p9 = scmp.lt.s32.totalorder %s984_s29, %s870_s18 }
  0x1c   : > { %p867_p10 = pnand %p865_p6, %p851_p11  ;;  %p873_p0 = scmp.lt.s32.totalorder %s871_s19, %s864_s11 }
  0x1e   : > { %p868_p12 = pneg %p867_p10  ;;  %p874_p1 = por %p873_p0, %p872_p9 }
  0x20   : > { %p875_p2 = pnand %p874_p1, %p868_p12 }
  0x22   : > { %878 = shalt.err (!%p875_p2)
}
  0x23   : > { %s916_s22 = smov 128   ;;  %s917_s23 = smov 8  }
  0x24   : > { %813 = dma.hbm_to_vmem [thread:$0]  (!%p986_p8), %s982_s27, 4096, %s984_s29, %s991_s4, %s916_s22, %s916_s22, %s917_s23  }
  0x25   : > { %p153_p11 = scmp.lt.s32.totalorder %s913_s15, 3  ;;  %p1232_p13 = scmp.ge.s32.totalorder %s913_s15, 1 }
  0x27   : > { %p154_p3 = pnand %p1232_p13, %p153_p11 }
  0x28   : > { %s159_s24 = sand.u32 (!%p154_p3), 1, %s905_s13  }
  0x29   : > { %157 = sbr.rel (%p154_p3) target bundleno = 305 (0x131), region = 32  ;;  %s665_s25 = sshll.u32 (!%p154_p3), %s159_s24, 8 }
  0x2a   : > { %s160_s26 = scalar_lea.sflag (!%p154_p3), [#allocation3], %s159_s24  ;;  %s1023_s28 = scalar_lea.vmem (!%p154_p3), [#allocation2], %s665_s25 }
  0x30   : > { %896 = dma.done.wait (%p973_p7), %s160_s26, 4096  }
  0x31   : > { %898 = vsyncadd (%p973_p7), %s160_s26, 4294963200  ;;  %vm236_vm0 = vcmask 261120   ;;  %v225_v0 = vld [vmem:[%s1227_s1] sm:$0xff]  ;;  %v226_v1 = vld [vmem:[%s1227_s1 + $0x8] sm:$0xff]  ;;  %s666_s8 = sshll.u32 %s657_s16, 5 }
  0x32   : > { %v227_v2 = vld [vmem:[%s1227_s1 + $0x10] sm:$0xff]  ;;  %v796_v3 = vpack.c.bf16 %v226_v1, %v225_v0  ;;  %v228_v4 = vld [vmem:[%s1227_s1 + $0x18] sm:$0xff]  ;;  %v193_v5 = vld [vmem:[%s1023_s28] sm:$0xff]  ;;  %p188_p7 = scmp.lt.s32.totalorder %s666_s8, 63 }
  0x33   : > { %v209_v6 = vld [vmem:[%s1023_s28 + $0x80] sm:$0xff]  ;;  %v800_v7 = vpack.c.bf16 %v228_v4, %v227_v2  ;;  %748 = vmatprep.mubr.msk.f32.mxu0 %vm236_vm0, %v193_v5  ;;  %v194_v8 = vld [vmem:[%s1023_s28 + $0x8] sm:$0xff]  ;;  %v195_v10 = vld [vmem:[%s1023_s28 + $0x10] sm:$0xff] }
  0x34   : > { %772 = vmatprep.mubr.msk.f32.mxu1 %vm236_vm0, %v209_v6  ;;  %797 = vmatprep.subr.bf16.mxu0 %v796_v3  ;;  %v210_v9 = vld [vmem:[%s1023_s28 + $0x88] sm:$0xff]  ;;  %v211_v11 = vld [vmem:[%s1023_s28 + $0x90] sm:$0xff]  ;;  %v196_v12 = vld [vmem:[%s1023_s28 + $0x18] sm:$0xff]  ;;  %s1238_s8 = smov (!%p188_p7, %s666_s8), 63 }
  0x35   : > { %804 = vmatprep.subr.bf16.mxu1 %v796_v3  ;;  %799 = vmatpush3.bf16.msra.mxu0 %v796_v3  ;;  %v212_v13 = vld [vmem:[%s1023_s28 + $0x98] sm:$0xff]  ;;  %v197_v14 = vld [vmem:[%s1023_s28 + $0x20] sm:$0xff]  ;;  %v198_v16 = vld [vmem:[%s1023_s28 + $0x28] sm:$0xff]  ;;  %s667_s9 = sshll.u32 %s1238_s8, 3 }
  0x36   : > { %806 = vmatpush3.bf16.msra.mxu1 %v796_v3  ;;  %801 = vmatprep.subr.bf16.mxu0 %v800_v7  ;;  %v213_v15 = vld [vmem:[%s1023_s28 + $0xa0] sm:$0xff]  ;;  %v214_v17 = vld [vmem:[%s1023_s28 + $0xa8] sm:$0xff]  ;;  %v199_v18 = vld [vmem:[%s1023_s28 + $0x30] sm:$0xff]  ;;  %s1115_s19 = scalar_lea.vmem %s1229_s3, %s667_s9 }
  0x37   : > { %805 = vmatprep.subr.bf16.mxu1 %v800_v7  ;;  %v215_v19 = vld [vmem:[%s1023_s28 + $0xb0] sm:$0xff]  ;;  %v200_v20 = vld [vmem:[%s1023_s28 + $0x38] sm:$0xff]  ;;  %v201_v22 = vld [vmem:[%s1023_s28 + $0x40] sm:$0xff] }
  0x38   : > { %v216_v21 = vld [vmem:[%s1023_s28 + $0xb8] sm:$0xff]  ;;  %v217_v23 = vld [vmem:[%s1023_s28 + $0xc0] sm:$0xff]  ;;  %v202_v24 = vld [vmem:[%s1023_s28 + $0x48] sm:$0xff] }
  0x39   : > { %803 = vmatpush3.bf16.msra.mxu0 %v800_v7  ;;  %v218_v25 = vld [vmem:[%s1023_s28 + $0xc8] sm:$0xff]  ;;  %v203_v26 = vld [vmem:[%s1023_s28 + $0x50] sm:$0xff]  ;;  %v204_v28 = vld [vmem:[%s1023_s28 + $0x58] sm:$0xff] }
  0x3a   : > { %807 = vmatpush3.bf16.msra.mxu1 %v800_v7  ;;  %v219_v27 = vld [vmem:[%s1023_s28 + $0xd0] sm:$0xff]  ;;  %v220_v29 = vld [vmem:[%s1023_s28 + $0xd8] sm:$0xff]  ;;  %v205_v30 = vld [vmem:[%s1023_s28 + $0x60] sm:$0xff] }
  0x3b   : > { %v221_v31 = vld [vmem:[%s1023_s28 + $0xe0] sm:$0xff]  ;;  %v206_v32 = vld [vmem:[%s1023_s28 + $0x68] sm:$0xff]  ;;  %v207_v34 = vld [vmem:[%s1023_s28 + $0x70] sm:$0xff] }
  0x3c   : > { %749 = vmatmul.mubr.msk.f32.vlgmr.msra.gmra.mrb[0].mxu0 %vm236_vm0, %v194_v8  ;;  %v222_v33 = vld [vmem:[%s1023_s28 + $0xe8] sm:$0xff]  ;;  %v223_v35 = vld [vmem:[%s1023_s28 + $0xf0] sm:$0xff]  ;;  %v208_v36 = vld [vmem:[%s1023_s28 + $0x78] sm:$0xff] }
  0x3d   : > { %773 = vmatmul.mubr.msk.f32.vlgmr.msra.gmra.mrb[0].mxu1 %vm236_vm0, %v210_v9  ;;  %751 = vmatprep.mubr.msk.f32.mxu0 %vm236_vm0, %v195_v10  ;;  %v224_v37 = vld [vmem:[%s1023_s28 + $0xf8] sm:$0xff]  ;;  %v1110_v38 = vld [vmem:[%s1228_s2] ss:$0 sm:$0xff] }
  0x3e   : > { %775 = vmatprep.mubr.msk.f32.mxu1 %vm236_vm0, %v211_v11 }
  0x40   : > { %752 = vmatmul.mubr.msk.f32.gmra.mrb[2].mxu0 %vm236_vm0, %v196_v12 }
  0x41   : > { %776 = vmatmul.mubr.msk.f32.gmra.mrb[2].mxu1 %vm236_vm0, %v212_v13  ;;  %754 = vmatprep.mubr.msk.f32.mxu0 %vm236_vm0, %v197_v14 }
  0x42   : > { %778 = vmatprep.mubr.msk.f32.mxu1 %vm236_vm0, %v213_v15 }
  0x44   : > { %755 = vmatmul.mubr.msk.f32.gmra.mrb[4].mxu0 %vm236_vm0, %v198_v16 }
  0x45   : > { %779 = vmatmul.mubr.msk.f32.gmra.mrb[4].mxu1 %vm236_vm0, %v214_v17  ;;  %757 = vmatprep.mubr.msk.f32.mxu0 %vm236_vm0, %v199_v18 }
  0x46   : > { %781 = vmatprep.mubr.msk.f32.mxu1 %vm236_vm0, %v215_v19 }
  0x48   : > { %758 = vmatmul.mubr.msk.f32.gmra.mrb[6].mxu0 %vm236_vm0, %v200_v20 }
  0x49   : > { %782 = vmatmul.mubr.msk.f32.gmra.mrb[6].mxu1 %vm236_vm0, %v216_v21  ;;  %760 = vmatprep.mubr.msk.f32.mxu0 %vm236_vm0, %v201_v22 }
  0x4a   : > { %784 = vmatprep.mubr.msk.f32.mxu1 %vm236_vm0, %v217_v23 }
  0x4c   : > { %761 = vmatmul.mubr.msk.f32.gmra.mrb[8].mxu0 %vm236_vm0, %v202_v24 }
  0x4d   : > { %785 = vmatmul.mubr.msk.f32.gmra.mrb[8].mxu1 %vm236_vm0, %v218_v25  ;;  %763 = vmatprep.mubr.msk.f32.mxu0 %vm236_vm0, %v203_v26 }
  0x4e   : > { %787 = vmatprep.mubr.msk.f32.mxu1 %vm236_vm0, %v219_v27 }
  0x50   : > { %764 = vmatmul.mubr.msk.f32.gmra.mrb[10].mxu0 %vm236_vm0, %v204_v28 }
  0x51   : > { %788 = vmatmul.mubr.msk.f32.gmra.mrb[10].mxu1 %vm236_vm0, %v220_v29  ;;  %766 = vmatprep.mubr.msk.f32.mxu0 %vm236_vm0, %v205_v30 }
  0x52   : > { %790 = vmatprep.mubr.msk.f32.mxu1 %vm236_vm0, %v221_v31 }
  0x54   : > { %767 = vmatmul.mubr.msk.f32.gmra.mrb[12].mxu0 %vm236_vm0, %v206_v32 }
  0x55   : > { %791 = vmatmul.mubr.msk.f32.gmra.mrb[12].mxu1 %vm236_vm0, %v222_v33  ;;  %769 = vmatprep.mubr.msk.f32.mxu0 %vm236_vm0, %v207_v34 }
  0x56   : > { %793 = vmatprep.mubr.msk.f32.mxu1 %vm236_vm0, %v223_v35 }
  0x58   : > { %770 = vmatmul.mubr.msk.f32.gmra.mrb[14].mxu0 %vm236_vm0, %v208_v36 }
  0x59   : > { %794 = vmatmul.mubr.msk.f32.gmra.mrb[14].mxu1 %vm236_vm0, %v224_v37 }
 0x10f   : > { %v750_v39 = vpop.f32.mrb[0].mxu0 }
 0x110   : > { %v774_v40 = vpop.f32.mrb[0].mxu1  ;;  %v405_v41 = vadd.f32 %v750_v39, %v1110_v38  ;;  %v399_v43 = vpop.f32.mrb[1].mxu0 }
 0x111   : > { %v485_v42 = vadd.f32 %v774_v40, %v1110_v38  ;;  %v479_v44 = vpop.f32.mrb[1].mxu1  ;;  %v400_v45 = vadd.f32 %v1110_v38, %v399_v43 }
 0x112   : > { %v480_v46 = vadd.f32 %v1110_v38, %v479_v44  ;;  %559 = vst.msk [vmem:[%s1115_s19 + $0x8] sm:$0xff] %vm236_vm0, %v405_v41 }
 0x113   : > { %575 = vst.msk [vmem:[%s1115_s19 + $0x88] sm:$0xff] %vm236_vm0, %v485_v42  ;;  %558 = vst.msk [vmem:[%s1115_s19] sm:$0xff] %vm236_vm0, %v400_v45  ;;  %v753_v47 = vpop.f32.mrb[2].mxu0 }
 0x114   : > { %574 = vst.msk [vmem:[%s1115_s19 + $0x80] sm:$0xff] %vm236_vm0, %v480_v46  ;;  %v777_v48 = vpop.f32.mrb[2].mxu1  ;;  %v415_v49 = vadd.f32 %v753_v47, %v1110_v38  ;;  %v409_v51 = vpop.f32.mrb[3].mxu0 }
 0x115   : > { %v495_v50 = vadd.f32 %v777_v48, %v1110_v38  ;;  %v489_v52 = vpop.f32.mrb[3].mxu1  ;;  %v410_v53 = vadd.f32 %v1110_v38, %v409_v51 }
 0x116   : > { %v490_v54 = vadd.f32 %v1110_v38, %v489_v52  ;;  %561 = vst.msk [vmem:[%s1115_s19 + $0x18] sm:$0xff] %vm236_vm0, %v415_v49 }
 0x117   : > { %577 = vst.msk [vmem:[%s1115_s19 + $0x98] sm:$0xff] %vm236_vm0, %v495_v50  ;;  %560 = vst.msk [vmem:[%s1115_s19 + $0x10] sm:$0xff] %vm236_vm0, %v410_v53  ;;  %v756_v55 = vpop.f32.mrb[4].mxu0 }
 0x118   : > { %576 = vst.msk [vmem:[%s1115_s19 + $0x90] sm:$0xff] %vm236_vm0, %v490_v54  ;;  %v780_v56 = vpop.f32.mrb[4].mxu1  ;;  %v425_v57 = vadd.f32 %v756_v55, %v1110_v38  ;;  %v419_v59 = vpop.f32.mrb[5].mxu0 }
 0x119   : > { %v505_v58 = vadd.f32 %v780_v56, %v1110_v38  ;;  %v499_v60 = vpop.f32.mrb[5].mxu1  ;;  %v420_v61 = vadd.f32 %v1110_v38, %v419_v59 }
 0x11a   : > { %v500_v62 = vadd.f32 %v1110_v38, %v499_v60  ;;  %563 = vst.msk [vmem:[%s1115_s19 + $0x28] sm:$0xff] %vm236_vm0, %v425_v57 }
 0x11b   : > { %579 = vst.msk [vmem:[%s1115_s19 + $0xa8] sm:$0xff] %vm236_vm0, %v505_v58  ;;  %562 = vst.msk [vmem:[%s1115_s19 + $0x20] sm:$0xff] %vm236_vm0, %v420_v61  ;;  %v759_v63 = vpop.f32.mrb[6].mxu0 }
 0x11c   : > { %578 = vst.msk [vmem:[%s1115_s19 + $0xa0] sm:$0xff] %vm236_vm0, %v500_v62  ;;  %v783_v0 = vpop.f32.mrb[6].mxu1  ;;  %v435_v1 = vadd.f32 %v759_v63, %v1110_v38  ;;  %v429_v3 = vpop.f32.mrb[7].mxu0 }
 0x11d   : > { %v515_v2 = vadd.f32 %v783_v0, %v1110_v38  ;;  %v509_v4 = vpop.f32.mrb[7].mxu1  ;;  %v430_v5 = vadd.f32 %v1110_v38, %v429_v3 }
 0x11e   : > { %v510_v6 = vadd.f32 %v1110_v38, %v509_v4  ;;  %565 = vst.msk [vmem:[%s1115_s19 + $0x38] sm:$0xff] %vm236_vm0, %v435_v1 }
 0x11f   : > { %581 = vst.msk [vmem:[%s1115_s19 + $0xb8] sm:$0xff] %vm236_vm0, %v515_v2  ;;  %564 = vst.msk [vmem:[%s1115_s19 + $0x30] sm:$0xff] %vm236_vm0, %v430_v5  ;;  %v762_v7 = vpop.f32.mrb[8].mxu0 }
 0x120   : > { %580 = vst.msk [vmem:[%s1115_s19 + $0xb0] sm:$0xff] %vm236_vm0, %v510_v6  ;;  %v786_v8 = vpop.f32.mrb[8].mxu1  ;;  %v445_v9 = vadd.f32 %v762_v7, %v1110_v38  ;;  %v439_v11 = vpop.f32.mrb[9].mxu0 }
 0x121   : > { %v525_v10 = vadd.f32 %v786_v8, %v1110_v38  ;;  %v519_v12 = vpop.f32.mrb[9].mxu1  ;;  %v440_v13 = vadd.f32 %v1110_v38, %v439_v11 }
 0x122   : > { %v520_v14 = vadd.f32 %v1110_v38, %v519_v12  ;;  %567 = vst.msk [vmem:[%s1115_s19 + $0x48] sm:$0xff] %vm236_vm0, %v445_v9 }
 0x123   : > { %583 = vst.msk [vmem:[%s1115_s19 + $0xc8] sm:$0xff] %vm236_vm0, %v525_v10  ;;  %566 = vst.msk [vmem:[%s1115_s19 + $0x40] sm:$0xff] %vm236_vm0, %v440_v13  ;;  %v765_v15 = vpop.f32.mrb[10].mxu0 }
 0x124   : > { %582 = vst.msk [vmem:[%s1115_s19 + $0xc0] sm:$0xff] %vm236_vm0, %v520_v14  ;;  %v789_v16 = vpop.f32.mrb[10].mxu1  ;;  %v455_v17 = vadd.f32 %v765_v15, %v1110_v38  ;;  %v449_v19 = vpop.f32.mrb[11].mxu0 }
 0x125   : > { %v535_v18 = vadd.f32 %v789_v16, %v1110_v38  ;;  %v529_v20 = vpop.f32.mrb[11].mxu1  ;;  %v450_v21 = vadd.f32 %v1110_v38, %v449_v19 }
 0x126   : > { %v530_v22 = vadd.f32 %v1110_v38, %v529_v20  ;;  %569 = vst.msk [vmem:[%s1115_s19 + $0x58] sm:$0xff] %vm236_vm0, %v455_v17 }
 0x127   : > { %585 = vst.msk [vmem:[%s1115_s19 + $0xd8] sm:$0xff] %vm236_vm0, %v535_v18  ;;  %568 = vst.msk [vmem:[%s1115_s19 + $0x50] sm:$0xff] %vm236_vm0, %v450_v21  ;;  %v768_v23 = vpop.f32.mrb[12].mxu0 }
 0x128   : > { %584 = vst.msk [vmem:[%s1115_s19 + $0xd0] sm:$0xff] %vm236_vm0, %v530_v22  ;;  %v792_v24 = vpop.f32.mrb[12].mxu1  ;;  %v465_v25 = vadd.f32 %v768_v23, %v1110_v38  ;;  %v459_v27 = vpop.f32.mrb[13].mxu0 }
 0x129   : > { %v545_v26 = vadd.f32 %v792_v24, %v1110_v38  ;;  %v539_v28 = vpop.f32.mrb[13].mxu1  ;;  %v460_v29 = vadd.f32 %v1110_v38, %v459_v27 }
 0x12a   : > { %v540_v30 = vadd.f32 %v1110_v38, %v539_v28  ;;  %571 = vst.msk [vmem:[%s1115_s19 + $0x68] sm:$0xff] %vm236_vm0, %v465_v25 }
 0x12b   : > { %587 = vst.msk [vmem:[%s1115_s19 + $0xe8] sm:$0xff] %vm236_vm0, %v545_v26  ;;  %570 = vst.msk [vmem:[%s1115_s19 + $0x60] sm:$0xff] %vm236_vm0, %v460_v29  ;;  %v771_v31 = vpop.f32.mrb[14].mxu0 }
 0x12c   : > { %586 = vst.msk [vmem:[%s1115_s19 + $0xe0] sm:$0xff] %vm236_vm0, %v540_v30  ;;  %v795_v32 = vpop.f32.mrb[14].mxu1  ;;  %v475_v33 = vadd.f32 %v771_v31, %v1110_v38  ;;  %v469_v35 = vpop.f32.mrb[15].mxu0 }
 0x12d   : > { %v555_v34 = vadd.f32 %v795_v32, %v1110_v38  ;;  %v549_v36 = vpop.f32.mrb[15].mxu1  ;;  %v470_v37 = vadd.f32 %v1110_v38, %v469_v35 }
 0x12e   : > { %v550_v39 = vadd.f32 %v1110_v38, %v549_v36  ;;  %573 = vst.msk [vmem:[%s1115_s19 + $0x78] sm:$0xff] %vm236_vm0, %v475_v33 }
 0x12f   : > { %589 = vst.msk [vmem:[%s1115_s19 + $0xf8] sm:$0xff] %vm236_vm0, %v555_v34  ;;  %572 = vst.msk [vmem:[%s1115_s19 + $0x70] sm:$0xff] %vm236_vm0, %v470_v37 }
 0x130   : > { %588 = vst.msk [vmem:[%s1115_s19 + $0xf0] sm:$0xff] %vm236_vm0, %v550_v39 }
 0x131 PF: > { %p13_p8 = scmp.ge.s32.totalorder %s958_s17, 4   ;;  %s1233_s12 = smov %s905_s13 }
 0x132   : > { %s1234_s13 = smov %s909_s14  ;;  %s1235_s14 = smov %s968_s20 }
 0x133   : > { %s1236_s15 = smov %s958_s17  ;;  %15 = sbr.rel (!%p13_p8) target bundleno = 3 (0x3), region = 72 }
 0x13a   :  { %612 = vsyncpa [#allocation3], 1 }
 0x13b   :  { %614 = vsyncpa [#allocation3 + $0x1], 1 }

</bundles_post_ra>
